<compile_context>
chip_gen: v6e
topology: v6e:2x2x1
jax: 0.10.0
libtpu: 0.0.40
codegen_flags: <defaults>
</compile_context>

<pallas_src>
import jax
import jax.numpy as jnp
from jax.experimental import pallas as pl
from jax.experimental.pallas import tpu as pltpu


def one_layer_kernel(x_ref, w1_ref, b1_ref, w2_ref, b2_ref, o_ref):
    # hidden = leaky_relu(x @ W1 + b1)   (LeakyReLU default negative_slope = 0.01)
    x = x_ref[...]
    h = jnp.dot(x, w1_ref[...], preferred_element_type=jnp.float32) + b1_ref[...]
    h = jnp.where(h > 0, h, jnp.float32(0.01) * h)
    # Second projection (H -> 1): VPU multiply + lane reduction instead of an
    # N=1 MXU matmul; b2 is a scalar read from SMEM.
    out = jnp.sum(h * w2_ref[...], axis=-1, keepdims=True) + b2_ref[0]
    o_ref[...] = out.astype(o_ref.dtype)


def one_layer_model(x, w1_t, b1, w2_row, b2, *, block_b=512):
    """x: (B, D) f32, w1_t: (D, H), b1: (1, H), w2_row: (1, H), b2: (1,) f32 scalar."""
    B, D = x.shape
    H = w1_t.shape[1]
    # TODO(synk): dropout(p=0.05) would need pltpu.prng_* for training mode; eval mode -> identity.

    # Batch tile: multiple of 8 sublanes, capped at block_b; pad B up to a multiple.
    TB = min(block_b, B)
    TB = ((TB + 7) // 8) * 8
    Bp = ((B + TB - 1) // TB) * TB
    if Bp != B:
        x = jnp.pad(x, ((0, Bp - B), (0, 0)))
    num_tiles = Bp // TB

    out = pl.pallas_call(
        one_layer_kernel,
        out_shape=jax.ShapeDtypeStruct((Bp, 1), x.dtype),
        grid=(num_tiles,),
        in_specs=[
            pl.BlockSpec((TB, D), lambda i: (i, 0)),            # x: tiled over batch
            pl.BlockSpec((D, H), lambda i: (0, 0)),             # W1: resident across grid
            pl.BlockSpec((1, H), lambda i: (0, 0)),             # b1: resident
            pl.BlockSpec((1, H), lambda i: (0, 0)),             # w2 row: resident
            pl.BlockSpec(memory_space=pltpu.MemorySpace.SMEM),  # b2 scalar in SMEM
        ],
        out_specs=pl.BlockSpec((TB, 1), lambda i: (i, 0)),
        compiler_params=pltpu.CompilerParams(
            dimension_semantics=("parallel",),
        ),
    )(x, w1_t, b1, w2_row, b2)

    return out[:B]


def init_params(key, input_size, hidden_size):
    """Deterministic PyTorch-style Linear init: U(-1/sqrt(fan_in), 1/sqrt(fan_in))."""
    k1, k2, k3, k4 = jax.random.split(key, 4)
    bound1 = 1.0 / (input_size ** 0.5)
    bound2 = 1.0 / (hidden_size ** 0.5)
    # W1 stored transposed to (in, out) for the MXU; W2 stored as a (1, H) row for the
    # VPU mul + lane reduce; b2 stored as a single SMEM scalar.
    w1_t = jax.random.uniform(k1, (input_size, hidden_size), jnp.float32, -bound1, bound1)
    b1 = jax.random.uniform(k2, (1, hidden_size), jnp.float32, -bound1, bound1)
    w2_row = jax.random.uniform(k3, (1, hidden_size), jnp.float32, -bound2, bound2)
    b2 = jax.random.uniform(k4, (1,), jnp.float32, -bound2, bound2)
    return w1_t, b1, w2_row, b2


if __name__ == "__main__":
    batch = 8
    input_size = 32
    hidden_size = 64

    key = jax.random.PRNGKey(0)
    kx, kp = jax.random.split(key)
    x = jax.random.normal(kx, (batch, input_size), jnp.float32)
    w1_t, b1, w2_row, b2 = init_params(kp, input_size, hidden_size)

    out = one_layer_model(x, w1_t, b1, w2_row, b2)
    out = jax.block_until_ready(out)

    # Pure-JAX reference check.
    h_ref = x @ w1_t + b1
    h_ref = jnp.where(h_ref > 0, h_ref, 0.01 * h_ref)
    ref = h_ref @ w2_row.T + b2
    assert out.shape == (batch, 1)
    assert jnp.allclose(out, ref, atol=1e-5, rtol=1e-5)

    print("KERNEL_OK")
</pallas_src>

<mosaic_0001>
module attributes {stable_mosaic.version = 11 : i64} {
  func.func @one_layer_kernel(%arg0: i32, %arg1: memref<8x32xf32, #tpu.memory_space<vmem>>, %arg2: memref<32x64xf32, #tpu.memory_space<vmem>>, %arg3: memref<1x64xf32, #tpu.memory_space<vmem>>, %arg4: memref<1x64xf32, #tpu.memory_space<vmem>>, %arg5: memref<1xf32, #tpu.memory_space<smem>>, %arg6: memref<8x1xf32, #tpu.memory_space<vmem>>) attributes {dimension_semantics = [#tpu.dimension_semantics<parallel>], iteration_bounds = array<i64: 1>, scalar_prefetch = 0 : i64, scratch_operands = 0 : i64, tpu.core_type = #tpu.core_type<tc>, window_params = [{transform_indices = @transform_0, window_bounds = array<i64: 8, 32>}, {pipeline_mode = #tpu.pipeline_mode<synchronous>, transform_indices = @transform_1, window_bounds = array<i64: 32, 64>}, {pipeline_mode = #tpu.pipeline_mode<synchronous>, transform_indices = @transform_2, window_bounds = array<i64: 1, 64>}, {pipeline_mode = #tpu.pipeline_mode<synchronous>, transform_indices = @transform_3, window_bounds = array<i64: 1, 64>}, {transform_indices = @transform_4, window_bounds = array<i64: 1>}, {transform_indices = @transform_5, window_bounds = array<i64: 8, 1>}]} {
    %c0 = arith.constant 0 : index
    %c0_0 = arith.constant 0 : index
    %0 = vector.load %arg1[%c0, %c0_0] : memref<8x32xf32, #tpu.memory_space<vmem>>, vector<8x32xf32>
    %c0_1 = arith.constant 0 : index
    %c0_2 = arith.constant 0 : index
    %1 = vector.load %arg2[%c0_1, %c0_2] : memref<32x64xf32, #tpu.memory_space<vmem>>, vector<32x64xf32>
    %cst = arith.constant dense<0.000000e+00> : vector<8x64xf32>
    %2 = tpu.matmul %0, %1, %cst {dimension_numbers = #tpu.dot_dimension_numbers<[1], [0], [0], [1], [0, 0, 1, 1], [], []>} : vector<8x32xf32>, vector<32x64xf32>, vector<8x64xf32> -> vector<8x64xf32>
    %c0_3 = arith.constant 0 : index
    %c0_4 = arith.constant 0 : index
    %3 = vector.load %arg3[%c0_3, %c0_4] : memref<1x64xf32, #tpu.memory_space<vmem>>, vector<1x64xf32>
    %4 = vector.broadcast %3 : vector<1x64xf32> to vector<8x64xf32>
    %5 = arith.addf %2, %4 : vector<8x64xf32>
    %cst_5 = arith.constant 0.000000e+00 : f32
    %6 = vector.broadcast %cst_5 : f32 to vector<8x64xf32>
    %7 = arith.cmpf ogt, %5, %6 : vector<8x64xf32>
    %cst_6 = arith.constant 0.00999999977 : f32
    %8 = vector.broadcast %cst_6 : f32 to vector<8x64xf32>
    %9 = arith.mulf %8, %5 : vector<8x64xf32>
    %10 = arith.select %7, %5, %9 : vector<8x64xi1>, vector<8x64xf32>
    %c0_7 = arith.constant 0 : index
    %c0_8 = arith.constant 0 : index
    %11 = vector.load %arg4[%c0_7, %c0_8] : memref<1x64xf32, #tpu.memory_space<vmem>>, vector<1x64xf32>
    %12 = vector.broadcast %11 : vector<1x64xf32> to vector<8x64xf32>
    %13 = arith.mulf %10, %12 : vector<8x64xf32>
    %cst_9 = arith.constant dense<0.000000e+00> : vector<8xf32>
    %14 = vector.multi_reduction <add>, %13, %cst_9 [1] : vector<8x64xf32> to vector<8xf32>
    %15 = vector.shape_cast %14 : vector<8xf32> to vector<8x1xf32>
    %c0_10 = arith.constant 0 : index
    %16 = memref.load %arg5[%c0_10] : memref<1xf32, #tpu.memory_space<smem>>
    %17 = vector.broadcast %16 : f32 to vector<8x1xf32>
    %18 = arith.addf %15, %17 : vector<8x1xf32>
    %c0_11 = arith.constant 0 : index
    %c0_12 = arith.constant 0 : index
    %19 = vector.load %arg6[%c0_11, %c0_12] : memref<8x1xf32, #tpu.memory_space<vmem>>, vector<8x1xf32>
    tpu.vector_store %arg6[%c0_11, %c0_12], %18 {strides = array<i32>} : memref<8x1xf32, #tpu.memory_space<vmem>>, vector<8x1xf32>,
    return
  }
  func.func @transform_0(%arg0: i32) -> (i32, i32) {
    %c0_i32 = arith.constant 0 : i32
    %c0_i32_0 = arith.constant 0 : i32
    return %arg0, %c0_i32 : i32, i32
  }
  func.func @transform_1(%arg0: i32) -> (i32, i32) {
    %c0_i32 = arith.constant 0 : i32
    %c0_i32_0 = arith.constant 0 : i32
    %c0_i32_1 = arith.constant 0 : i32
    return %c0_i32, %c0_i32_0 : i32, i32
  }
  func.func @transform_2(%arg0: i32) -> (i32, i32) {
    %c0_i32 = arith.constant 0 : i32
    %c0_i32_0 = arith.constant 0 : i32
    %c0_i32_1 = arith.constant 0 : i32
    return %c0_i32, %c0_i32_0 : i32, i32
  }
  func.func @transform_3(%arg0: i32) -> (i32, i32) {
    %c0_i32 = arith.constant 0 : i32
    %c0_i32_0 = arith.constant 0 : i32
    %c0_i32_1 = arith.constant 0 : i32
    return %c0_i32, %c0_i32_0 : i32, i32
  }
  func.func @transform_4(%arg0: i32) -> i32 {
    %c0_i32 = arith.constant 0 : i32
    %c0_i32_0 = arith.constant 0 : i32
    return %c0_i32 : i32
  }
  func.func @transform_5(%arg0: i32) -> (i32, i32) {
    %c0_i32 = arith.constant 0 : i32
    %c0_i32_0 = arith.constant 0 : i32
    return %arg0, %c0_i32 : i32, i32
  }
}

</mosaic_0001>

<bundles_post_ra>
// kernel: tpu_custom_call.1
= control target key start
LH: loop header
LB: loop body
LE: loop exit
PB: predicated region body
PF: predicated region fallthrough
CT: control target
= control target key end

     0   :  { %11 = vsyncpa [#allocation4], 0  ;;  %s282_s0 = inlined_call_operand.hbm [shape: f32[8,32], index: 0, kind: input, shape index: {}]   ;;  %s283_s1 = inlined_call_operand.hbm [shape: f32[32,64], index: 1, kind: input, shape index: {}]   ;;  %s284_s2 = inlined_call_operand.vmem [shape: f32[1,64], index: 2, kind: input, shape index: {}]   ;;  %s285_s3 = inlined_call_operand.vmem [shape: f32[1,64], index: 3, kind: input, shape index: {}]   ;;  %s286_s4 = inlined_call_operand.<no memory space> [shape: f32[1], index: 4, kind: input, shape index: {}]   ;;  %s287_s5 = inlined_call_operand.vmem [shape: f32[8,1], index: 5, kind: output, shape index: {}]  }
   0x1   :  { %12 = vsyncpa [#allocation6], 0  ;;  %s228_s18 = smov [#allocation3]   ;;  %s229_s20 = smov [#allocation5]  }
   0x2   :  { %s19_s19 = sshll.u32 %s228_s18, 4  ;;  %s28_s21 = sshll.u32 %s229_s20, 4  ;;  %s20_s19 = int_to_ptr.vmem [resolvable:$true] %s19_s19  ;;  %s29_s21 = int_to_ptr.vmem [resolvable:$true] %s28_s21 }
   0x3   :  { %s192_s22 = scalar_lea.vmem %s20_s19, 128  ;;  %p197_p1 = scmp.lt.s32.totalorder %s20_s19, %s20_s19 }
   0x4   :  { %p193_p0 = scmp.ne.s32.totalorder %s20_s19, %s192_s22  ;;  %p198_p2 = scmp.lt.s32.totalorder %s192_s22, %s192_s22 }
   0x6   :  { %p199_p3 = por %p198_p2, %p197_p1 }
   0x8   :  { %p200_p4 = pnand %p199_p3, %p193_p0 }
   0xa   :  { %203 = shalt.err (!%p200_p4)
}
   0xb   :  { %22 = dma.hbm_to_vmem [thread:$0]  %s282_s0, 128, %s20_s19, [#allocation4]  }
   0xc   :  { %s212_s25 = scalar_lea.vmem %s29_s21, 512  ;;  %p217_p6 = scmp.lt.s32.totalorder %s29_s21, %s29_s21 }
   0xd   :  { %p213_p5 = scmp.ne.s32.totalorder %s29_s21, %s212_s25  ;;  %p218_p7 = scmp.lt.s32.totalorder %s212_s25, %s212_s25 }
   0xf   :  { %p219_p8 = por %p218_p7, %p217_p6 }
  0x11   :  { %p220_p9 = pnand %p219_p8, %p213_p5 }
  0x13   :  { %223 = shalt.err (!%p220_p9)
}
  0x14   :  { %s230_s26 = smov 128   ;;  %s231_s27 = smov 8  }
  0x15   :  { %34 = dma.hbm_to_vmem [thread:$0]  %s283_s1, 512, %s29_s21, [#allocation6], %s230_s26, %s230_s26, %s231_s27  }
  0x16   :  { %224 = dma.done.wait [#allocation4], 128  }
  0x17   :  { %225 = vsyncadd [#allocation4], 4294967168 }
  0x18   :  { %226 = dma.done.wait [#allocation6], 512  }
  0x19   :  { %227 = vsyncadd [#allocation6], 4294966784  ;;  %v232_v0 = vmov 0.0   ;;  %vm233_vm0 = vmmov 0   ;;  %v51_v1 = vld [vmem:[#allocation5 + $0x18] sm:$0xff]  ;;  %v50_v2 = vld [vmem:[#allocation5 + $0x10] sm:$0xff]  ;;  %v149_v15 = vstv %s286_s4 }
  0x1a   :  { %167 = vmatprep.subr.mxu0 %v232_v0  ;;  %175 = vmatprep.mubr.msk.f32.mxu0 %vm233_vm0, %v232_v0  ;;  %v49_v3 = vld [vmem:[#allocation5 + $0x8] sm:$0xff]  ;;  %v48_v4 = vld [vmem:[#allocation5] sm:$0xff]  ;;  %v47_v5 = vld [vmem:[#allocation3] sm:$0xff]  ;;  %vm59_vm1 = vcmask 261120   ;;  %vm144_vm3 = vcmask 523264   ;;  %vm151_vm4 = vcmask 7168  }
  0x1b   :  { %168 = vmatpush3.msra.mxu0 %v51_v1  ;;  %v159_v6 = vld [vmem:[%s284_s2] ss:$0 sm:$0xff] }
  0x1c   :  { %169 = vmatprep.subr.mxu0 %v232_v0  ;;  %v161_v11 = vld [vmem:[%s285_s3] ss:$0 sm:$0xff] }
  0x1d   :  { %170 = vmatpush3.msra.mxu0 %v50_v2 }
  0x1e   :  { %171 = vmatprep.subr.mxu0 %v232_v0 }
  0x1f   :  { %172 = vmatpush3.msra.mxu0 %v49_v3 }
  0x20   :  { %173 = vmatprep.subr.mxu0 %v232_v0 }
  0x21   :  { %174 = vmatpush3.msra.mxu0 %v48_v4 }
  0x22   :  { %176 = vmatmul.mubr.msk.f32.vlgmr.msra.gmra.mxu0 %vm59_vm1, %v47_v5 }
  0xe2   :  { %v129_v7 = vpop.f32.mrf.mxu0 }
  0xe3   :  { %v130_v8 = vadd.f32 %v159_v6, %v129_v7 }
  0xe4   :  { %v177_v9 = vpop.f32.mrf.mxu0 }
  0xe5   :  { %v134_v10 = vmul.f32 0.01, %v130_v8  ;;  %vm133_vm2 = vcmp.gt.f32.partialorder %v130_v8, 0.0 }
  0xe7   :  { %v135_v12 = vsel %vm133_vm2, %v130_v8, %v134_v10 }
  0xe8   :  { %v143_v13 = vmul.f32 %v161_v11, %v135_v12 }
  0xea   :  { %v145_v14 = vsel %vm144_vm3, %v143_v13, 0.0 }
  0xeb   :  { %146 = vadd.xlane.f32.xlu0 %v145_v14 }
 0x174   :  { %v147_v16 = vpop.xlane.xlu0 %146 }
 0x175   :  { %v150_v17 = vadd.f32 %v149_v15, %v147_v16 }
 0x177   :  { %152 = vst.msk [vmem:[%s287_s5] sm:$0xff] %vm151_vm4, %v150_v17 }
 0x178   :  { %157 = vsyncpa [#allocation4], 1 }
 0x179   :  { %158 = vsyncpa [#allocation6], 1 }

</bundles_post_ra>
